<compile_context>
chip_gen: v7x
topology: tpu7x:2x2x1
jax: 0.10.0
libtpu: 0.0.40
codegen_flags: <defaults>
</compile_context>

<pallas_src>
import numpy as np
import jax
import jax.numpy as jnp
from jax.experimental import pallas as pl
from jax.experimental.pallas import tpu as pltpu


def _sle_kernel(x2_ref, x1_ref, pool_ref, w1_ref, b1_ref, w2_ref, b2_ref,
                o_ref, gate_ref):
    # Gate is computed once per batch element (first spatial tile only).
    @pl.when(pl.program_id(1) == 0)
    def _compute_gate():
        x2 = x2_ref[0]                                                  # (C2, HW2)
        # AdaptiveAvgPool2d((4,4)) as a single MXU matmul with the pooling matrix.
        pooled = jnp.dot(x2, pool_ref[...],
                         preferred_element_type=jnp.float32)           # (C2, 16)

        # Conv2d(C2, C2, kernel=4) on a 4x4 map == full contraction over (C_in, 16).
        # NOTE: a dot_general with two contracting dims does not lower on Mosaic
        # TPU, so the contraction stays elementwise + reduce; it now runs once
        # per batch element (off the streaming hot path).
        # TODO(synk): for very large C2, split into per-tap matmuls to avoid the
        # (C2, C2, 16) intermediate.
        t = w1_ref[...] * pooled[None, :, :]                            # (C2, C2, 16)
        y = jnp.sum(jnp.sum(t, axis=2), axis=1, keepdims=True)          # (C2, 1)
        y = y + b1_ref[...]
        y = jnp.where(y >= 0, y, 0.1 * y)                               # LeakyReLU(0.1)

        # Conv2d(C2, C1, kernel=1) == (C1, C2) @ (C2, 1)
        z = jnp.dot(w2_ref[...], y,
                    preferred_element_type=jnp.float32) + b2_ref[...]   # (C1, 1)
        gate_ref[...] = jax.nn.sigmoid(z)                               # Sigmoid

    # Streaming part: lane-dense tile of x1_skip * gate (gate broadcast on lanes).
    o_ref[...] = (x1_ref[...] * gate_ref[...][None, :, :]).astype(o_ref.dtype)


def _pick_tile(hw, max_lanes):
    """Largest multiple-of-128 divisor of hw that is <= max_lanes, else hw."""
    best = hw
    for t in range(128, min(hw, max_lanes) + 1, 128):
        if hw % t == 0:
            best = t
    return best


def sle_block(x1_skip, x2, w1, b1, w2, b2, *, max_tile_lanes=2048):
    N, C1, H1, W1 = x1_skip.shape
    N2, C2, H2, W2 = x2.shape
    assert N == N2 and H2 % 4 == 0 and W2 % 4 == 0
    HW1, HW2 = H1 * W1, H2 * W2
    kh, kw = H2 // 4, W2 // 4

    # Exact AdaptiveAvgPool2d((4,4)) pooling matrix (H2, W2 divisible by 4).
    P = np.zeros((HW2, 16), dtype=np.float32)
    for h in range(H2):
        for w in range(W2):
            P[h * W2 + w, (h // kh) * 4 + (w // kw)] = 1.0 / (kh * kw)
    P = jnp.asarray(P)

    tile = _pick_tile(HW1, max_tile_lanes)
    n_tiles = HW1 // tile

    x1f = x1_skip.reshape(N, C1, HW1)
    x2f = x2.reshape(N, C2, HW2)
    w1f = w1.reshape(C2, C2, 16)          # (out, in, 4*4) taps, matches P's cell order
    b1c = b1.reshape(C2, 1)
    w2f = w2.reshape(C1, C2)              # 1x1 conv weight
    b2c = b2.reshape(C1, 1)

    out = pl.pallas_call(
        _sle_kernel,
        out_shape=jax.ShapeDtypeStruct((N, C1, HW1), x1_skip.dtype),
        grid_spec=pltpu.PrefetchScalarGridSpec(
            num_scalar_prefetch=0,
            grid=(N, n_tiles),
            in_specs=[
                # x2: constant over t -> no re-DMA across the spatial tiles.
                pl.BlockSpec((1, C2, HW2), lambda n, t: (n, 0, 0)),
                # x1_skip: lane-dense streaming tile.
                pl.BlockSpec((1, C1, tile), lambda n, t: (n, 0, t)),
                pl.BlockSpec((HW2, 16), lambda n, t: (0, 0)),         # pooling matrix
                pl.BlockSpec((C2, C2, 16), lambda n, t: (0, 0, 0)),   # conv4x4 weight
                pl.BlockSpec((C2, 1), lambda n, t: (0, 0)),           # conv4x4 bias
                pl.BlockSpec((C1, C2), lambda n, t: (0, 0)),          # conv1x1 weight
                pl.BlockSpec((C1, 1), lambda n, t: (0, 0)),           # conv1x1 bias
            ],
            out_specs=pl.BlockSpec((1, C1, tile), lambda n, t: (n, 0, t)),
            scratch_shapes=[pltpu.VMEM((C1, 1), jnp.float32)],        # per-batch gate
        ),
        compiler_params=pltpu.CompilerParams(
            dimension_semantics=("parallel", "arbitrary"),
            vmem_limit_bytes=48 * 1024 * 1024,
        ),
    )(x2f, x1f, P, w1f, b1c, w2f, b2c)

    return out.reshape(N, C1, H1, W1)


def sle_reference(x1_skip, x2, w1, b1, w2, b2):
    # Pure-JAX reference of the PyTorch forward (NCHW).
    N, C2, H2, W2 = x2.shape
    kh, kw = H2 // 4, W2 // 4
    pooled = x2.reshape(N, C2, 4, kh, 4, kw).mean(axis=(3, 5))          # (N, C2, 4, 4)
    y = jnp.einsum("ncij,ocij->no", pooled, w1) + b1[None, :]           # (N, C2)
    y = jnp.where(y >= 0, y, 0.1 * y)                                   # LeakyReLU(0.1)
    z = jnp.einsum("nc,oc->no", y, w2.reshape(w2.shape[0], w2.shape[1])) + b2[None, :]
    s = jax.nn.sigmoid(z)                                               # (N, C1)
    return x1_skip * s[:, :, None, None]


if __name__ == "__main__":
    key = jax.random.PRNGKey(0)
    k1, k2, k3, k4, k5, k6 = jax.random.split(key, 6)

    # in_ch1 = C1 (channels of x1_skip), in_ch2 = C2 (channels of x2)
    N, C1, C2 = 2, 8, 8
    H1 = W1 = 32          # high-res skip feature
    H2 = W2 = 16          # low-res excitation feature (divisible by 4)

    x1_skip = jax.random.normal(k1, (N, C1, H1, W1), jnp.float32)
    x2 = jax.random.normal(k2, (N, C2, H2, W2), jnp.float32)

    # Deterministic synthetic parameters (shapes from nn.Conv2d in __init__).
    w1 = jax.random.normal(k3, (C2, C2, 4, 4), jnp.float32) * 0.1   # Conv2d(C2, C2, 4)
    b1 = jax.random.normal(k4, (C2,), jnp.float32) * 0.1
    w2 = jax.random.normal(k5, (C1, C2, 1, 1), jnp.float32) * 0.1   # Conv2d(C2, C1, 1)
    b2 = jax.random.normal(k6, (C1,), jnp.float32) * 0.1

    # max_tile_lanes=512 -> 2 spatial tiles per batch element, exercising the
    # pl.when-gated gate cache; production defaults to larger lane tiles.
    out = sle_block(x1_skip, x2, w1, b1, w2, b2, max_tile_lanes=512)
    out = jax.block_until_ready(out)

    ref = sle_reference(x1_skip, x2, w1, b1, w2, b2)
    err = float(jnp.max(jnp.abs(out - ref)))
    assert jnp.allclose(out, ref, atol=1e-4, rtol=1e-4), f"max abs err {err}"

    print("KERNEL_OK")
</pallas_src>

<mosaic_0001>
module attributes {stable_mosaic.version = 11 : i64} {
  func.func @_sle_kernel(%arg0: i32, %arg1: i32, %arg2: memref<1x8x256xf32, #tpu.memory_space<vmem>>, %arg3: memref<1x8x512xf32, #tpu.memory_space<vmem>>, %arg4: memref<256x16xf32, #tpu.memory_space<vmem>>, %arg5: memref<8x8x16xf32, #tpu.memory_space<vmem>>, %arg6: memref<8x1xf32, #tpu.memory_space<vmem>>, %arg7: memref<8x8xf32, #tpu.memory_space<vmem>>, %arg8: memref<8x1xf32, #tpu.memory_space<vmem>>, %arg9: memref<1x8x512xf32, #tpu.memory_space<vmem>>, %arg10: memref<8x1xf32, #tpu.memory_space<vmem>>) attributes {dimension_semantics = [#tpu.dimension_semantics<parallel>, #tpu.dimension_semantics<arbitrary>], iteration_bounds = array<i64: 2, 2>, scalar_prefetch = 0 : i64, scratch_operands = 1 : i64, tpu.core_type = #tpu.core_type<tc>, window_params = [{transform_indices = @transform_0, window_bounds = array<i64: 1, 8, 256>}, {transform_indices = @transform_1, window_bounds = array<i64: 1, 8, 512>}, {pipeline_mode = #tpu.pipeline_mode<synchronous>, transform_indices = @transform_2, window_bounds = array<i64: 256, 16>}, {pipeline_mode = #tpu.pipeline_mode<synchronous>, transform_indices = @transform_3, window_bounds = array<i64: 8, 8, 16>}, {pipeline_mode = #tpu.pipeline_mode<synchronous>, transform_indices = @transform_4, window_bounds = array<i64: 8, 1>}, {pipeline_mode = #tpu.pipeline_mode<synchronous>, transform_indices = @transform_5, window_bounds = array<i64: 8, 8>}, {pipeline_mode = #tpu.pipeline_mode<synchronous>, transform_indices = @transform_6, window_bounds = array<i64: 8, 1>}, {transform_indices = @transform_7, window_bounds = array<i64: 1, 8, 512>}]} {
    %c0_i32 = arith.constant 0 : i32
    %0 = arith.cmpi eq, %arg1, %c0_i32 : i32
    %1 = arith.extui %0 : i1 to i32
    %c0_i32_0 = arith.constant 0 : i32
    %2 = arith.cmpi ne, %1, %c0_i32_0 : i32
    scf.if %2 {
      %c0_8 = arith.constant 0 : index
      %c0_9 = arith.constant 0 : index
      %c0_10 = arith.constant 0 : index
      %9 = vector.load %arg2[%c0_8, %c0_9, %c0_10] : memref<1x8x256xf32, #tpu.memory_space<vmem>>, vector<1x8x256xf32>
      %10 = vector.shape_cast %9 : vector<1x8x256xf32> to vector<8x256xf32>
      %c0_11 = arith.constant 0 : index
      %c0_12 = arith.constant 0 : index
      %11 = vector.load %arg4[%c0_11, %c0_12] : memref<256x16xf32, #tpu.memory_space<vmem>>, vector<256x16xf32>
      %cst = arith.constant dense<0.000000e+00> : vector<8x16xf32>
      %12 = tpu.matmul %10, %11, %cst {dimension_numbers = #tpu.dot_dimension_numbers<[1], [0], [0], [1], [0, 0, 1, 1], [], []>} : vector<8x256xf32>, vector<256x16xf32>, vector<8x16xf32> -> vector<8x16xf32>
      %c0_13 = arith.constant 0 : index
      %c0_14 = arith.constant 0 : index
      %c0_15 = arith.constant 0 : index
      %13 = vector.load %arg5[%c0_13, %c0_14, %c0_15] : memref<8x8x16xf32, #tpu.memory_space<vmem>>, vector<8x8x16xf32>
      %14 = vector.shape_cast %12 : vector<8x16xf32> to vector<1x8x16xf32>
      %15 = vector.broadcast %14 : vector<1x8x16xf32> to vector<8x8x16xf32>
      %16 = arith.mulf %13, %15 : vector<8x8x16xf32>
      %cst_16 = arith.constant dense<0.000000e+00> : vector<8x8xf32>
      %17 = vector.multi_reduction <add>, %16, %cst_16 [2] : vector<8x8x16xf32> to vector<8x8xf32>
      %cst_17 = arith.constant dense<0.000000e+00> : vector<8xf32>
      %18 = vector.multi_reduction <add>, %17, %cst_17 [1] : vector<8x8xf32> to vector<8xf32>
      %19 = vector.shape_cast %18 : vector<8xf32> to vector<8x1xf32>
      %c0_18 = arith.constant 0 : index
      %c0_19 = arith.constant 0 : index
      %20 = vector.load %arg6[%c0_18, %c0_19] : memref<8x1xf32, #tpu.memory_space<vmem>>, vector<8x1xf32>
      %21 = arith.addf %19, %20 : vector<8x1xf32>
      %cst_20 = arith.constant 0.000000e+00 : f32
      %22 = vector.broadcast %cst_20 : f32 to vector<8x1xf32>
      %23 = arith.cmpf oge, %21, %22 : vector<8x1xf32>
      %cst_21 = arith.constant 1.000000e-01 : f32
      %24 = vector.broadcast %cst_21 : f32 to vector<8x1xf32>
      %25 = arith.mulf %24, %21 : vector<8x1xf32>
      %26 = arith.select %23, %21, %25 : vector<8x1xi1>, vector<8x1xf32>
      %c0_22 = arith.constant 0 : index
      %c0_23 = arith.constant 0 : index
      %27 = vector.load %arg7[%c0_22, %c0_23] : memref<8x8xf32, #tpu.memory_space<vmem>>, vector<8x8xf32>
      %cst_24 = arith.constant dense<0.000000e+00> : vector<8x1xf32>
      %28 = tpu.matmul %27, %26, %cst_24 {dimension_numbers = #tpu.dot_dimension_numbers<[1], [0], [0], [1], [0, 0, 1, 1], [], []>} : vector<8x8xf32>, vector<8x1xf32>, vector<8x1xf32> -> vector<8x1xf32>
      %c0_25 = arith.constant 0 : index
      %c0_26 = arith.constant 0 : index
      %29 = vector.load %arg8[%c0_25, %c0_26] : memref<8x1xf32, #tpu.memory_space<vmem>>, vector<8x1xf32>
      %30 = arith.addf %28, %29 : vector<8x1xf32>
      %31 = arith.negf %30 : vector<8x1xf32>
      %32 = math.exp %31 : vector<8x1xf32>
      %cst_27 = arith.constant 1.000000e+00 : f32
      %33 = vector.broadcast %cst_27 : f32 to vector<8x1xf32>
      %34 = arith.addf %33, %32 : vector<8x1xf32>
      %35 = arith.divf %33, %34 : vector<8x1xf32>
      %c0_28 = arith.constant 0 : index
      %c0_29 = arith.constant 0 : index
      %36 = vector.load %arg10[%c0_28, %c0_29] : memref<8x1xf32, #tpu.memory_space<vmem>>, vector<8x1xf32>
      tpu.vector_store %arg10[%c0_28, %c0_29], %35 {strides = array<i32>} : memref<8x1xf32, #tpu.memory_space<vmem>>, vector<8x1xf32>,
    } else {
    }
    %c0 = arith.constant 0 : index
    %c0_1 = arith.constant 0 : index
    %c0_2 = arith.constant 0 : index
    %3 = vector.load %arg3[%c0, %c0_1, %c0_2] : memref<1x8x512xf32, #tpu.memory_space<vmem>>, vector<1x8x512xf32>
    %c0_3 = arith.constant 0 : index
    %c0_4 = arith.constant 0 : index
    %4 = vector.load %arg10[%c0_3, %c0_4] : memref<8x1xf32, #tpu.memory_space<vmem>>, vector<8x1xf32>
    %5 = vector.shape_cast %4 : vector<8x1xf32> to vector<1x8x1xf32>
    %6 = vector.broadcast %5 : vector<1x8x1xf32> to vector<1x8x512xf32>
    %7 = arith.mulf %3, %6 : vector<1x8x512xf32>
    %c0_5 = arith.constant 0 : index
    %c0_6 = arith.constant 0 : index
    %c0_7 = arith.constant 0 : index
    %8 = vector.load %arg9[%c0_5, %c0_6, %c0_7] : memref<1x8x512xf32, #tpu.memory_space<vmem>>, vector<1x8x512xf32>
    tpu.vector_store %arg9[%c0_5, %c0_6, %c0_7], %7 {strides = array<i32>} : memref<1x8x512xf32, #tpu.memory_space<vmem>>, vector<1x8x512xf32>,
    return
  }
  func.func @transform_0(%arg0: i32, %arg1: i32) -> (i32, i32, i32) {
    %c0_i32 = arith.constant 0 : i32
    %c0_i32_0 = arith.constant 0 : i32
    %c0_i32_1 = arith.constant 0 : i32
    return %arg0, %c0_i32, %c0_i32_0 : i32, i32, i32
  }
  func.func @transform_1(%arg0: i32, %arg1: i32) -> (i32, i32, i32) {
    %c0_i32 = arith.constant 0 : i32
    %c0_i32_0 = arith.constant 0 : i32
    return %arg0, %c0_i32, %arg1 : i32, i32, i32
  }
  func.func @transform_2(%arg0: i32, %arg1: i32) -> (i32, i32) {
    %c0_i32 = arith.constant 0 : i32
    %c0_i32_0 = arith.constant 0 : i32
    %c0_i32_1 = arith.constant 0 : i32
    return %c0_i32, %c0_i32_0 : i32, i32
  }
  func.func @transform_3(%arg0: i32, %arg1: i32) -> (i32, i32, i32) {
    %c0_i32 = arith.constant 0 : i32
    %c0_i32_0 = arith.constant 0 : i32
    %c0_i32_1 = arith.constant 0 : i32
    %c0_i32_2 = arith.constant 0 : i32
    return %c0_i32, %c0_i32_0, %c0_i32_1 : i32, i32, i32
  }
  func.func @transform_4(%arg0: i32, %arg1: i32) -> (i32, i32) {
    %c0_i32 = arith.constant 0 : i32
    %c0_i32_0 = arith.constant 0 : i32
    %c0_i32_1 = arith.constant 0 : i32
    return %c0_i32, %c0_i32_0 : i32, i32
  }
  func.func @transform_5(%arg0: i32, %arg1: i32) -> (i32, i32) {
    %c0_i32 = arith.constant 0 : i32
    %c0_i32_0 = arith.constant 0 : i32
    %c0_i32_1 = arith.constant 0 : i32
    return %c0_i32, %c0_i32_0 : i32, i32
  }
  func.func @transform_6(%arg0: i32, %arg1: i32) -> (i32, i32) {
    %c0_i32 = arith.constant 0 : i32
    %c0_i32_0 = arith.constant 0 : i32
    %c0_i32_1 = arith.constant 0 : i32
    return %c0_i32, %c0_i32_0 : i32, i32
  }
  func.func @transform_7(%arg0: i32, %arg1: i32) -> (i32, i32, i32) {
    %c0_i32 = arith.constant 0 : i32
    %c0_i32_0 = arith.constant 0 : i32
    return %arg0, %c0_i32, %arg1 : i32, i32, i32
  }
}

</mosaic_0001>

<bundles_post_ra>
// kernel: tpu_custom_call.1
= control target key start
LH: loop header
LB: loop body
LE: loop exit
PB: predicated region body
PF: predicated region fallthrough
CT: control target
= control target key end

     0   :  { %12 = vsyncpa [#allocation4], 0  ;;  %s1370_s0 = inlined_call_operand.vmem [shape: f32[2,8,256], index: 0, kind: input, shape index: {}]   ;;  %s1371_s1 = inlined_call_operand.vmem [shape: f32[2,8,1024], index: 1, kind: input, shape index: {}]   ;;  %s1372_s2 = inlined_call_operand.vmem [shape: f32[256,16], index: 2, kind: input, shape index: {}]   ;;  %s1373_s3 = inlined_call_operand.vmem [shape: f32[8,8,16], index: 3, kind: input, shape index: {}]   ;;  %s1374_s4 = inlined_call_operand.vmem [shape: f32[8,1], index: 4, kind: input, shape index: {}]   ;;  %s1375_s5 = inlined_call_operand.vmem [shape: f32[8,8], index: 5, kind: input, shape index: {}]   ;;  %s1376_s6 = inlined_call_operand.vmem [shape: f32[8,1], index: 6, kind: input, shape index: {}]   ;;  %s1377_s7 = inlined_call_operand.hbm [shape: f32[2,8,1024], index: 7, kind: output, shape index: {}]  }
   0x1   :  { %14 = vsyncpa [#allocation4 + $0x1], 0  ;;  %s1066_s24 = smov 0   ;;  %s1068_s25 = smov 0  }
   0x2   :  { %s1070_s26 = smov 0   ;;  %s1072_s27 = smov 0  }
   0x3   :  { %s1074_s28 = smov 0   ;;  %s1076_s29 = smov 0  }
   0x4   :  { %s1078_s30 = smov 0   ;;  %s1080_s8 = smov 0  }
   0x5 LB: > { %1385 = sst [smem:[#allocation6_spill]] %s1000_s26  ;;  %s752_s9 = sadd.s32 4294967295, %s1020_s8   ;;  %s1020_s8 = sphi %s1080_s8, %s20_s8   ;;  %s1016_s30 = sphi %s1078_s30, %s1401_s30   ;;  %s1012_s29 = sphi %s1076_s29, %s1400_s29   ;;  %s1008_s28 = sphi %s1074_s28, %s1399_s28   ;;  %s1004_s27 = sphi %s1072_s27, %s1398_s27   ;;  %s1000_s26 = sphi %s1070_s26, %s1397_s26   ;;  %s996_s25 = sphi %s1068_s25, %s1403_s25   ;;  %s992_s24 = sphi %s1066_s24, %s1402_s24  }
   0x6   : > { %1386 = sst [smem:[#allocation7_spill]] %s1012_s29  ;;  %s753_s10 = sadd.s32 4294967294, %s1020_s8  }
   0x7   : > { %1387 = sst [smem:[#allocation8_spill]] %s1016_s30  ;;  %s29_s11 = sadd.s32 1, %s1012_s29 }
   0x8   : > { %p30_p0 = scmp.ge.s32.totalorder %s29_s11, 2  ;;  %s32_s12 = sadd.s32 1, %s1016_s30 }
   0x9   : > { %p210_p1 = scmp.ne.s32.totalorder %s1000_s26, %s996_s25  ;;  %p211_p2 = scmp.eq.s32.totalorder %s752_s9, 3 }
   0xa   : > { %s1405_s11 = smov (%p30_p0, %s29_s11), 0  ;;  %s1407_s12 = smov (!%p30_p0, %s32_s12), %s1016_s30 }
   0xb   : > { %1388 = sst [smem:[#allocation9_spill]] %s1405_s11  ;;  %s196_s13 = ssub.s32 %s1012_s29, %s1405_s11 }
   0xc   : > { %p1117_p3 = por %p211_p2, %p210_p1  ;;  %p34_p4 = scmp.ge.s32.totalorder %s1407_s12, 2 }
   0xd   : > { %p216_p5 = scmp.ne.s32.totalorder %s996_s25, %s992_s24  ;;  %p217_p6 = scmp.eq.s32.totalorder %s753_s10, 3 }
   0xe   : > { %p756_p7 = scmp.ge.s32.totalorder %s1020_s8, 1  ;;  %s1409_s12 = smov (%p34_p4, %s1407_s12), 0 }
   0xf   : > { %1390 = sst [smem:[#allocation10_spill]] %s1409_s12  ;;  %p1126_p8 = por %p217_p6, %p216_p5 }
  0x10   : > { %p271_p9 = scmp.lt.s32.totalorder %s1020_s8, 5  ;;  %s195_s16 = ssub.s32 %s1016_s30, %s1409_s12 }
  0x11   : > { %s1391_s15 = scalar_select %p1126_p8, 1, 0 }
  0x12   : > { %s200_s17 = sadd.s32 1, %s1000_s26  ;;  %s197_s18 = sor.u32 %s196_s13, %s195_s16 }
  0x13   : > { %1392 = sst [smem:[#allocation11_spill]] %s1391_s15  ;;  %p272_p10 = pnand %p756_p7, %p271_p9 }
  0x14   : > { %p198_p11 = scmp.eq.s32.totalorder %s197_s18, 0  ;;  %s1382_s20 = sand.u32 (!%p272_p10), 1, %s996_s25  }
  0x15   : > { %275 = sbr.rel (%p272_p10) target bundleno = 983 (0x3d7), region = 48  ;;  %p312_p12 = scmp.lt.s32.totalorder (!%p272_p10), %s1008_s28, 1 }
  0x16   : > { %s1135_s19 = scalar_select %p198_p11, %s1000_s26, %s200_s17  }
  0x17   : > { %s757_s21 = sshll.u32 (!%p272_p10), %s1382_s20, 5  ;;  %s1142_s22 = sshll.u32 (!%p272_p10), %s1004_s27, 2 }
  0x18   : > { %1393 = sst [smem:[#allocation12_spill]] %s1135_s19  ;;  %p320_p13 = scmp.lt.s32.totalorder (!%p272_p10), %s1142_s22, 7 }
  0x19   : > { %s1157_s19 = scalar_lea.vmem (!%p272_p10), [#allocation3], %s757_s21  ;;  %p763_p0 = scmp.ne.s32.totalorder (!%p272_p10), %s1004_s27, 0 }
  0x1c   : > { %s313_s23 = scalar_select %p312_p12, %s1008_s28, 1 }
  0x1d   : > { %s321_s9 = scalar_select %p320_p13, %s1142_s22, 7 }
  0x1e   : > { %s772_s10 = sshll.u32 %s313_s23, 4  ;;  %s761_s13 = sshll.u32 %s313_s23, 3  ;;  %v350_v0 = vld [vmem:[%s1372_s2 + $0x80] sm:$0xff] (!%p763_p0)  ;;  %v351_v1 = vld [vmem:[%s1372_s2 + $0x88] sm:$0xff] (!%p763_p0)  ;;  %v352_v5 = vld [vmem:[%s1372_s2 + $0x90] sm:$0xff] (!%p763_p0)  ;;  %vm452_vm0 = vcmask (!%p763_p0), 130048  }
  0x1f   : > { %s1150_s18 = scalar_lea.vmem %s1370_s0, %s772_s10  ;;  %s323_s12 = sadd.s32 %s761_s13, %s321_s9  ;;  %v334_v2 = vld [vmem:[%s1372_s2] sm:$0xff] (!%p763_p0)  ;;  %v815_v3 = vpack.c.bf16 (!%p763_p0), %v351_v1, %v350_v0  ;;  %v335_v4 = vld [vmem:[%s1372_s2 + $0x8] sm:$0xff] (!%p763_p0)  ;;  %v353_v6 = vld [vmem:[%s1372_s2 + $0x98] sm:$0xff] (!%p763_p0)  ;;  %vm519_vm1 = vcmask (!%p763_p0), 1041409   ;;  %vm521_vm2 = vcmask (!%p763_p0), 1042434   ;;  %vm523_vm3 = vcmask (!%p763_p0), 1043459  }
  0x20   : > { %s762_s11 = sshll.u32 %s323_s12, 3  ;;  %331 = sbr.rel (%p763_p0) target bundleno = 831 (0x33f), region = 52  ;;  %v817_v7 = vpack.c.bf16 (!%p763_p0), %v335_v4, %v334_v2  ;;  %v819_v8 = vpack.c.bf16 (!%p763_p0), %v353_v6, %v352_v5  ;;  %v336_v9 = vld [vmem:[%s1372_s2 + $0x10] sm:$0xff] (!%p763_p0)  ;;  %v337_v10 = vld [vmem:[%s1372_s2 + $0x18] sm:$0xff] (!%p763_p0)  ;;  %v354_v11 = vld [vmem:[%s1372_s2 + $0xa0] sm:$0xff] (!%p763_p0)  ;;  %vm525_vm4 = vcmask (!%p763_p0), 1044484  }
  0x21   : > { %s1155_s20 = scalar_lea.vmem %s1371_s1, %s762_s11  ;;  %816 = vmatprep.subr.bf16.mxu0 (!%p763_p0), %v815_v3  ;;  %v355_v12 = vld [vmem:[%s1372_s2 + $0xa8] sm:$0xff] (!%p763_p0)  ;;  %v821_v13 = vpack.c.bf16 (!%p763_p0), %v337_v10, %v336_v9  ;;  %v338_v15 = vld [vmem:[%s1372_s2 + $0x20] sm:$0xff] (!%p763_p0)  ;;  %v356_v17 = vld [vmem:[%s1372_s2 + $0xb0] sm:$0xff] (!%p763_p0)  ;;  %vm527_vm5 = vcmask (!%p763_p0), 1045509   ;;  %vm529_vm6 = vcmask (!%p763_p0), 1046534   ;;  %vm531_vm7 = vcmask (!%p763_p0), 1047559  }
  0x22   : > { %818 = vmatpush3.bf16.msra.mxu0 (!%p763_p0), %v817_v7  ;;  %v823_v14 = vpack.c.bf16 (!%p763_p0), %v355_v12, %v354_v11  ;;  %v339_v16 = vld [vmem:[%s1372_s2 + $0x28] sm:$0xff] (!%p763_p0)  ;;  %v357_v18 = vld [vmem:[%s1372_s2 + $0xb8] sm:$0xff] (!%p763_p0)  ;;  %v340_v21 = vld [vmem:[%s1372_s2 + $0x30] sm:$0xff] (!%p763_p0)  ;;  %vm534_vm8 = vcmask (!%p763_p0), 64512   ;;  %vm1023_vm9 = vmmov (!%p763_p0), 0   ;;  %vm624_vm11 = vcmask (!%p763_p0), 7168  }
  0x23   : > { %820 = vmatprep.subr.bf16.mxu0 (!%p763_p0), %v819_v8  ;;  %v825_v19 = vpack.c.bf16 (!%p763_p0), %v339_v16, %v338_v15  ;;  %v827_v20 = vpack.c.bf16 (!%p763_p0), %v357_v18, %v356_v17  ;;  %v341_v22 = vld [vmem:[%s1372_s2 + $0x38] sm:$0xff] (!%p763_p0)  ;;  %v358_v23 = vld [vmem:[%s1372_s2 + $0xc0] sm:$0xff] (!%p763_p0)  ;;  %v359_v24 = vld [vmem:[%s1372_s2 + $0xc8] sm:$0xff] (!%p763_p0) }
  0x24   : > { %v333_v25 = vld [vmem:[%s1150_s18 + $0x8] sm:$0xff] (!%p763_p0)  ;;  %v829_v26 = vpack.c.bf16 (!%p763_p0), %v341_v22, %v340_v21  ;;  %v831_v27 = vpack.c.bf16 (!%p763_p0), %v359_v24, %v358_v23  ;;  %v342_v28 = vld [vmem:[%s1372_s2 + $0x40] sm:$0xff] (!%p763_p0)  ;;  %v360_v30 = vld [vmem:[%s1372_s2 + $0xd0] sm:$0xff] (!%p763_p0) }
  0x25   : > { %430 = vmatprep.mubr.f32.mxu0 (!%p763_p0), %v333_v25  ;;  %v343_v29 = vld [vmem:[%s1372_s2 + $0x48] sm:$0xff] (!%p763_p0)  ;;  %v361_v31 = vld [vmem:[%s1372_s2 + $0xd8] sm:$0xff] (!%p763_p0)  ;;  %v344_v34 = vld [vmem:[%s1372_s2 + $0x50] sm:$0xff] (!%p763_p0) }
  0x26   : > { %822 = vmatpush3.bf16.msra.mxu0 (!%p763_p0), %v821_v13  ;;  %v833_v32 = vpack.c.bf16 (!%p763_p0), %v343_v29, %v342_v28  ;;  %v835_v33 = vpack.c.bf16 (!%p763_p0), %v361_v31, %v360_v30  ;;  %v345_v35 = vld [vmem:[%s1372_s2 + $0x58] sm:$0xff] (!%p763_p0)  ;;  %v362_v36 = vld [vmem:[%s1372_s2 + $0xe0] sm:$0xff] (!%p763_p0)  ;;  %v363_v37 = vld [vmem:[%s1372_s2 + $0xe8] sm:$0xff] (!%p763_p0)  ;;  %v485_v13 = vlaneseq (!%p763_p0) }
  0x27   : > { %824 = vmatprep.subr.bf16.mxu0 %v823_v14  ;;  %v837_v38 = vpack.c.bf16 %v345_v35, %v344_v34  ;;  %v839_v39 = vpack.c.bf16 %v363_v37, %v362_v36  ;;  %v346_v40 = vld [vmem:[%s1372_s2 + $0x60] sm:$0xff]  ;;  %v347_v41 = vld [vmem:[%s1372_s2 + $0x68] sm:$0xff]  ;;  %v364_v42 = vld [vmem:[%s1372_s2 + $0xf0] sm:$0xff] }
  0x28   : > { %v365_v43 = vld [vmem:[%s1372_s2 + $0xf8] sm:$0xff]  ;;  %v841_v44 = vpack.c.bf16 %v347_v41, %v346_v40  ;;  %v348_v46 = vld [vmem:[%s1372_s2 + $0x70] sm:$0xff]  ;;  %v332_v49 = vld [vmem:[%s1150_s18] sm:$0xff]  ;;  %v486_v14 = vand.u32 127, %v485_v13  ;;  %v488_v15 = vshrl.u32 %v485_v13, 7  ;;  %v1022_v41 = vmov 0.0  }
  0x29   : > { %v843_v45 = vpack.c.bf16 %v365_v43, %v364_v42  ;;  %v349_v47 = vld [vmem:[%s1372_s2 + $0x78] sm:$0xff]  ;;  %v438_v52 = vld [vmem:[%s1373_s3 + $0x10] sm:$0xff]  ;;  %v436_v53 = vld [vmem:[%s1373_s3] sm:$0xff]  ;;  %810 = vmatprep.subr.mxu1 %v1022_v41  ;;  %812 = vmatprep.mubr.msk.f32.mxu1 %vm1023_vm9, %v1022_v41 }
  0x2a   : > { %826 = vmatpush3.bf16.msra.mxu0 %v825_v19  ;;  %v845_v48 = vpack.c.bf16 %v349_v47, %v348_v46  ;;  %v439_v55 = vld [vmem:[%s1373_s3 + $0x18] sm:$0xff]  ;;  %v437_v56 = vld [vmem:[%s1373_s3 + $0x8] sm:$0xff]  ;;  %v440_v0 = vld [vmem:[%s1373_s3 + $0x20] sm:$0xff]  ;;  %v489_v18 = vsub.s32 %v486_v14, %v488_v15 }
  0x2b   : > { %828 = vmatprep.subr.bf16.mxu0 %v827_v20  ;;  %v441_v63 = vld [vmem:[%s1373_s3 + $0x28] sm:$0xff]  ;;  %v443_v5 = vld [vmem:[%s1373_s3 + $0x38] sm:$0xff]  ;;  %v442_v6 = vld [vmem:[%s1373_s3 + $0x30] sm:$0xff] }
  0x2c   : > { %v538_v42 = vld [vmem:[%s1374_s4] sm:$0xff] }
  0x2d   : > { %v543_v46 = vld [vmem:[%s1375_s5] sm:$0xff] }
  0x2e   : > { %830 = vmatpush3.bf16.msra.mxu0 %v829_v26 }
  0x2f   : > { %832 = vmatprep.subr.bf16.mxu0 %v831_v27 }
  0x32   : > { %834 = vmatpush3.bf16.msra.mxu0 %v833_v32 }
  0x33   : > { %836 = vmatprep.subr.bf16.mxu0 %v835_v33 }
  0x36   : > { %838 = vmatpush3.bf16.msra.mxu0 %v837_v38 }
  0x37   : > { %840 = vmatprep.subr.bf16.mxu0 %v839_v39 }
  0x3a   : > { %842 = vmatpush3.bf16.msra.mxu0 %v841_v44 }
  0x3b   : > { %844 = vmatprep.subr.bf16.mxu0 %v843_v45 }
  0x3e   : > { %846 = vmatpush3.bf16.msra.mxu0 %v845_v48  ;;  %v544_v48 = vld [vmem:[%s1376_s6] sm:$0xff] }
  0x41   : > { %431 = vmatmul.mubr.f32.vlgmr.msra.gmra.mrb[0].mxu0 %v332_v49 }
 0x114   : > { %v805_v50 = vpop.f32.mrb[0].mxu0 }
 0x115   : > { %v806_v51 = vpop.f32.mrb[1].mxu0 }
 0x116   : > { %v807_v54 = vadd.f32 %v806_v51, %v805_v50 }
 0x118   : > { %v446_v57 = vmul.f32 %v807_v54, %v438_v52  ;;  %v444_v58 = vmul.f32 %v807_v54, %v436_v53  ;;  %v447_v61 = vmul.f32 %v807_v54, %v439_v55  ;;  %v445_v62 = vmul.f32 %v807_v54, %v437_v56 }
 0x119   : > { %v449_v3 = vmul.f32 %v807_v54, %v441_v63  ;;  %v448_v4 = vmul.f32 %v807_v54, %v440_v0  ;;  %v451_v9 = vmul.f32 %v807_v54, %v443_v5  ;;  %v450_v10 = vmul.f32 %v807_v54, %v442_v6 }
 0x11a   : > { %v459_v59 = vsel %vm452_vm0, %v446_v57, 0.0  ;;  %v453_v60 = vsel %vm452_vm0, %v444_v58, 0.0  ;;  %v462_v1 = vsel %vm452_vm0, %v447_v61, 0.0  ;;  %v456_v2 = vsel %vm452_vm0, %v445_v62, 0.0 }
 0x11b   : > { %460 = vadd.xlane.f32.xlu1 %v459_v59  ;;  %454 = vadd.xlane.f32.xlu0 %v453_v60  ;;  %v468_v7 = vsel %vm452_vm0, %v449_v3, 0.0  ;;  %v465_v8 = vsel %vm452_vm0, %v448_v4, 0.0  ;;  %v474_v11 = vsel %vm452_vm0, %v451_v9, 0.0  ;;  %v471_v12 = vsel %vm452_vm0, %v450_v10, 0.0 }
 0x11f   : > { %463 = vadd.xlane.f32.xlu1 %v462_v1  ;;  %457 = vadd.xlane.f32.xlu0 %v456_v2 }
 0x123   : > { %469 = vadd.xlane.f32.xlu1 %v468_v7  ;;  %466 = vadd.xlane.f32.xlu0 %v465_v8 }
 0x127   : > { %475 = vadd.xlane.f32.xlu1 %v474_v11  ;;  %472 = vadd.xlane.f32.xlu0 %v471_v12 }
 0x1a8   : > { %v461_v16 = vpop.xlane.xlu1 %460  ;;  %v455_v17 = vpop.xlane.xlu0 %454 }
 0x1a9   : > { %v490_v21 = vrot.slane %v455_v17, %v489_v18  ;;  %v498_v23 = vrot.slane %v461_v16, %v489_v18 }
 0x1ac   : > { %v464_v19 = vpop.xlane.xlu1 %463  ;;  %v458_v20 = vpop.xlane.xlu0 %457 }
 0x1ad   : > { %v494_v22 = vrot.slane %v458_v20, %v489_v18  ;;  %v502_v24 = vrot.slane %v464_v19, %v489_v18 }
 0x1af   : > { %v520_v25 = vsel %vm519_vm1, %v494_v22, %v490_v21 }
 0x1b0   : > { %v522_v26 = vsel %vm521_vm2, %v498_v23, %v520_v25  ;;  %v470_v27 = vpop.xlane.xlu1 %469  ;;  %v467_v28 = vpop.xlane.xlu0 %466 }
 0x1b1   : > { %v524_v29 = vsel %vm523_vm3, %v502_v24, %v522_v26  ;;  %v506_v30 = vrot.slane %v467_v28, %v489_v18  ;;  %v510_v31 = vrot.slane %v470_v27, %v489_v18 }
 0x1b3   : > { %v526_v32 = vsel %vm525_vm4, %v506_v30, %v524_v29 }
 0x1b4   : > { %v476_v33 = vpop.xlane.xlu1 %475  ;;  %v473_v34 = vpop.xlane.xlu0 %472  ;;  %v528_v37 = vsel %vm527_vm5, %v510_v31, %v526_v32 }
 0x1b5   : > { %v518_v35 = vrot.slane %v476_v33, %v489_v18  ;;  %v514_v36 = vrot.slane %v473_v34, %v489_v18 }
 0x1b7   : > { %v530_v38 = vsel %vm529_vm6, %v514_v36, %v528_v37 }
 0x1b8   : > { %v532_v39 = vsel %vm531_vm7, %v518_v35, %v530_v38 }
 0x1b9   : > { %v535_v40 = vsel %vm534_vm8, %v532_v39, 0.0 }
 0x1ba   : > { %536 = vadd.xlane.f32.xlu0 %v535_v40 }
 0x247   : > { %v537_v43 = vpop.xlane.xlu0 %536 }
 0x248   : > { %v539_v44 = vadd.f32 %v538_v42, %v537_v43 }
 0x24a   : > { %vm540_vm10 = vcmp.ge.f32.partialorder %v539_v44, 0.0  ;;  %v541_v45 = vmul.f32 0.1, %v539_v44 }
 0x24c   : > { %v542_v47 = vsel %vm540_vm10, %v539_v44, %v541_v45 }
 0x24d   : > { %811 = vmatpush3.msra.mxu1 %v542_v47 }
 0x24e   : > { %813 = vmatmul.mubr.msk.f32.vlgmr.msra.gmra.mrb[0].mxu1 %vm534_vm8, %v543_v46 }
 0x321   : > { %v614_v49 = vpop.f32.mrb[0].mxu1 }
 0x322   : > { %v615_v50 = vadd.f32 %v614_v49, %v544_v48  ;;  %v814_v51 = vpop.f32.mrb[1].mxu1 }
 0x324   : > { %v765_v52 = vmul.f32 -1.442695, %v615_v50 }
 0x326   : > { %921 = vpow2.f32 %v765_v52 }
 0x330   : > { %v922_v53 = vpop.eup %921 }
 0x331   : > { %v621_v54 = vadd.f32 1.0, %v922_v53 }
 0x333   : > { %923 = vrcp.f32 %v621_v54 }
 0x33d   : > { %v924_v55 = vpop.eup %923 }
 0x33e   : > { %625 = vst.msk [vmem:[#allocation2] sm:$0xff] %vm624_vm11, %v924_v55 }
 0x33f PF: > { %v1024_v57 = vmov 0   ;;  %s768_s17 = sshll.u32 %s1008_s28, 3  ;;  %v626_v58 = vld [vmem:[%s1155_s20] sm:$0xff]  ;;  %v627_v59 = vld [vmem:[%s1155_s20 + $0x8] sm:$0xff]  ;;  %v628_v60 = vld [vmem:[%s1155_s20 + $0x10] sm:$0xff]  ;;  %s661_s16 = sshll.u32 %s1157_s19, 4  ;;  %s1313_s16 = int_to_ptr.vmem [resolvable:$true] %s661_s16 }
 0x340   : > { %925 = vset.pattern.permute.xlu0 %v1024_v57  ;;  %s657_s18 = sadd.s32 %s768_s17, %s1142_s22  ;;  %v629_v61 = vld [vmem:[%s1155_s20 + $0x18] sm:$0xff]  ;;  %s1394_s20 = sand.u32 1, %s996_s25  }
 0x341   : > { %s769_s23 = sshll.u32 %s657_s18, 7  ;;  %s645_s22 = scalar_lea.sflag [#allocation4], %s1394_s20 }
 0x342   : > { %s1311_s28 = scalar_lea.hbm %s1377_s7, %s769_s23  ;;  %s926_s29 = scalar_lea.vmem %s1313_s16, 512 }
 0x343   : > { %p927_p1 = scmp.ne.s32.totalorder %s1313_s16, %s926_s29  ;;  %s1025_s30 = smov [#allocation3]  }
 0x344   : > { %s930_s11 = sshll.u32 %s1025_s30, 4  ;;  %s931_s11 = int_to_ptr.vmem [resolvable:$false] %s930_s11 }
 0x345   : > { %v630_v56 = vld [vmem:[#allocation2] sm:$0xff]  ;;  %p928_p2 = pnand %p927_p1, %p1117_p3  ;;  %s932_s27 = scalar_lea.vmem %s931_s11, 1024 }
 0x346   : > { %633 = vperm.xlu0 %925, %v630_v56   ;;  %p933_p5 = scmp.lt.s32.totalorder %s1313_s16, %s931_s11  ;;  %p934_p6 = scmp.lt.s32.totalorder %s932_s27, %s926_s29 }
 0x347   : > { %p929_p4 = pneg %p928_p2 }
 0x348   : > { %p935_p7 = por %p934_p6, %p933_p5 }
 0x34a   : > { %p936_p9 = pnand %p935_p7, %p929_p4 }
 0x3c5   : > { %v634_v62 = vpop.permute.xlu0 %633 }
 0x3c6   : > { %v636_v63 = vmul.f32 %v634_v62, %v626_v58  ;;  %v637_v0 = vmul.f32 %v634_v62, %v627_v59  ;;  %v638_v1 = vmul.f32 %v634_v62, %v628_v60  ;;  %v639_v2 = vmul.f32 %v634_v62, %v629_v61 }
 0x3c8   : > { %640 = vst [vmem:[%s1157_s19] sm:$0xff] %v636_v63  ;;  %641 = vst [vmem:[%s1157_s19 + $0x8] sm:$0xff] %v637_v0 }
 0x3c9   : > { %642 = vst [vmem:[%s1157_s19 + $0x10] sm:$0xff] %v638_v1  ;;  %643 = vst [vmem:[%s1157_s19 + $0x18] sm:$0xff] %v639_v2 }
 0x3ca   : > { %939 = shalt.err (!%p936_p9)
}
 0x3cb   : > { %s940_s19 = scalar_lea.hbm %s1311_s28, 512  ;;  %s944_s15 = scalar_lea.hbm %s1377_s7, 2048 }
 0x3cc   : > { %p941_p10 = scmp.ne.s32.totalorder %s1311_s28, %s940_s19  ;;  %p945_p13 = scmp.lt.u32.totalorder %s1311_s28, %s1377_s7 }
 0x3cd   : > { %p946_p0 = scmp.lt.u32.totalorder %s944_s15, %s940_s19  ;;  %p948_p2 = scmp.lt.u32.totalorder %s940_s19, %s1311_s28 }
 0x3ce   : > { %p942_p11 = pnand %p941_p10, %p1117_p3 }
 0x3cf   : > { %p947_p1 = por %p946_p0, %p945_p13 }
 0x3d0   : > { %p943_p12 = pneg %p942_p11 }
 0x3d1   : > { %p949_p4 = por %p948_p2, %p947_p1 }
 0x3d3   : > { %p950_p5 = pnand %p949_p4, %p943_p12 }
 0x3d5   : > { %953 = shalt.err (!%p950_p5)
}
 0x3d6   : > { %847 = dma.vmem_to_hbm [thread:$0]  (%p1117_p3), %s1313_s16, 512, %s1311_s28, %s645_s22  }
 0x3d7 PF: > { %p853_p6 = scmp.ge.s32.totalorder %s1020_s8, 2  ;;  %s673_s18 = sand.u32 1, %s992_s24  }
 0x3d8   : > { %s674_s23 = scalar_lea.sflag [#allocation4], %s673_s18 }
 0x3d9   : > { %p850_p7 = pnand %p853_p6, %p1126_p8 }
 0x3db   : > { %987 = dma.done.wait (!%p850_p7), %s674_s23, 512  }
 0x3dc   : > { %989 = vsyncadd (!%p850_p7), %s674_s23, 4294966784  ;;  %s20_s8 = sadd.s32 1, %s1020_s8   ;;  %s1396_s9 = sld [smem:[#allocation6_spill]] }
 0x3dd   : > { %p17_p9 = scmp.ge.s32.totalorder %s20_s8, 6   ;;  %s1397_s26 = sld [smem:[#allocation12_spill]] }
 0x3de   : > { %s1398_s27 = sld [smem:[#allocation7_spill]]  ;;  %s1399_s28 = sld [smem:[#allocation8_spill]] }
 0x3df   : > { %s1400_s29 = sld [smem:[#allocation9_spill]]  ;;  %s1401_s30 = sld [smem:[#allocation10_spill]] }
 0x3e0   : > { %s1402_s24 = smov %s996_s25  ;;  %19 = sbr.rel (!%p17_p9) target bundleno = 5 (0x5), region = 90 }
 0x3e2   : > { %s1403_s25 = smov %s1396_s9 }
 0x3e7   :  { %679 = vsyncpa [#allocation4], 1 }
 0x3e8   :  { %681 = vsyncpa [#allocation4 + $0x1], 1 }

</bundles_post_ra>
